<compile_context>
chip_gen: v7x
topology: tpu7x:2x2x1
jax: 0.10.0
libtpu: 0.0.40
codegen_flags: <defaults>
</compile_context>

<pallas_src>
import functools

import jax
import jax.numpy as jnp
from jax.experimental import pallas as pl
from jax.experimental.pallas import tpu as pltpu


def _round_up(n, m):
    return ((n + m - 1) // m) * m


_ROW = 16  # row-tile alignment: covers f32 (8) and packed bf16 (16) sublanes


# ---------------------------------------------------------------------------
# Pallas kernel (one row-tile per grid step; weights resident in VMEM)
# ---------------------------------------------------------------------------
def _invariant_layer_kernel(
    x_ref, mask_ref,
    w1cat_ref, b1cat_ref, rb1x2_ref,     # fused first layer [rho.W1 | phi_in.W1]
    rW2_ref, rb2x2_ref,                  # rho second layer (bias pre-doubled)
    pW1_ref, pb1_ref,                    # phi first layer
    w2cat_ref, pb2_ref, qb2_ref,         # fused second layer [phi.W2 ; phi_in.W2]
    out_ref,
    *, d_hidden_pad,
):
    cdt = w1cat_ref.dtype                       # matmul operand dtype (bf16 or f32)
    x = x_ref[...].astype(cdt)

    def dot(a, w_ref):
        return jnp.dot(a, w_ref[...], preferred_element_type=jnp.float32)

    # (1) Fused first layer shared by rho and phi_in: one MXU push, 2*Dh lanes.
    t = dot(x, w1cat_ref) + b1cat_ref[...]      # [TM, 2*Dh], f32
    t_r = t[:, :d_hidden_pad]                   # rho pre-activation    (= x@rW1 + rb1)
    t_q = t[:, d_hidden_pad:]                   # phi_in pre-activation (= x@qW1 + qb1)

    # (2) Sign symmetrization with a single x@rW1:
    #     relu(s+rb1) + relu(-s+rb1) == relu(t_r) + relu(2*rb1 - t_r)
    r_h = jnp.maximum(t_r, 0.0) + jnp.maximum(rb1x2_ref[...] - t_r, 0.0)
    r = dot(r_h.astype(cdt), rW2_ref) + rb2x2_ref[...]       # = rho(x)+rho(-x), f32

    # (3) phi hidden layer on the symmetrized features; phi_in hidden is relu(t_q).
    h_p = jnp.maximum(dot(r.astype(cdt), pW1_ref) + pb1_ref[...], 0.0)   # [TM, Dh] f32
    h_q = jnp.maximum(t_q, 0.0)                                          # [TM, Dh] f32

    # (4) Fused masked second layer (single K=2*Dh MXU push, m in {0,1} per row):
    #     out = [m*h_p | (1-m)*h_q] @ [pW2 ; qW2] + (qb2 + m*(pb2 - qb2))
    #         = m*phi(r) + (1-m)*phi_in(x)
    m = mask_ref[...]                           # [TM, 1] f32, broadcasts over lanes
    om = 1.0 - m
    h_cat = jnp.concatenate(
        [(m * h_p).astype(cdt), (om * h_q).astype(cdt)], axis=-1)         # [TM, 2*Dh]
    bias = qb2_ref[...] + m * (pb2_ref[...] - qb2_ref[...])
    out_ref[...] = (dot(h_cat, w2cat_ref) + bias).astype(out_ref.dtype)


# ---------------------------------------------------------------------------
# Weight preparation: pad hidden/output dims to 128 lanes, fuse shared layers
# ---------------------------------------------------------------------------
def prepare_params(params, compute_dtype=jnp.bfloat16):
    d_in = params["rW1"].shape[0]
    d_h = params["rW1"].shape[1]
    d_out = params["pW2"].shape[1]
    # d_in (the streamed input's lane dim) is deliberately left UNPADDED: a
    # block whose last dim equals the full array dim is legal, the MXU pads
    # K<128 internally, and padding would 4x the HBM bytes streamed for x.
    Di, Dh, Do = d_in, _round_up(d_h, 128), _round_up(d_out, 128)

    def pad_w(w, r, c):
        return jnp.zeros((r, c), jnp.float32).at[: w.shape[0], : w.shape[1]].set(w)

    def pad_b(b, c):
        return jnp.zeros((1, c), jnp.float32).at[:, : b.shape[1]].set(b)

    rW1, rb1 = pad_w(params["rW1"], Di, Dh), pad_b(params["rb1"], Dh)
    qW1, qb1 = pad_w(params["qW1"], Di, Dh), pad_b(params["qb1"], Dh)
    pW2, qW2 = pad_w(params["pW2"], Dh, Do), pad_w(params["qW2"], Dh, Do)

    prep = dict(
        W1cat=jnp.concatenate([rW1, qW1], axis=1),            # [Di, 2*Dh]
        b1cat=jnp.concatenate([rb1, qb1], axis=1),             # [1, 2*Dh]
        rb1x2=2.0 * rb1,                                        # folded doubled bias
        rW2=pad_w(params["rW2"], Dh, Di),
        rb2x2=2.0 * pad_b(params["rb2"], Di),                   # folded doubled bias
        pW1=pad_w(params["pW1"], Di, Dh), pb1=pad_b(params["pb1"], Dh),
        W2cat=jnp.concatenate([pW2, qW2], axis=0),              # [2*Dh, Do]
        pb2=pad_b(params["pb2"], Do), qb2=pad_b(params["qb2"], Do),
    )
    # Only matmul operands are cast: MXU runs bf16 natively on every generation
    # (f32 accumulation), while bias add / ReLU / masked blend stay f32 so the
    # VPU/EUP path is fine on v5e too.
    for k in ("W1cat", "rW2", "pW1", "W2cat"):
        prep[k] = prep[k].astype(compute_dtype)
    return prep, (Di, Dh, Do, d_out)


def _choose_tm(n_rows, tm_max):
    rows = _round_up(n_rows, _ROW)
    tm = min(tm_max, rows)
    steps = -(-rows // tm)
    # v7x: keep an (even, >=4-step) grid when the problem is big enough so the
    # "parallel" row axis splits across both TensorCores and each TC still has
    # >=2 steps to double-buffer; tm stays a multiple of _ROW.
    if rows >= 4 * _ROW:
        target = max(4, steps)
        if target % 2:
            target += 1
        tm = min(tm, _round_up(-(-rows // target), _ROW))
    return tm


# ---------------------------------------------------------------------------
# Wrapper
# ---------------------------------------------------------------------------
def invariant_layer_forward(x, mask_hidden, params, *,
                            compute_dtype=jnp.bfloat16,
                            out_dtype=jnp.float32,
                            tm_max=2048,
                            return_padded=False):
    """x: [N, d_in] f32, mask_hidden: [N, 1] f32 (1 = hidden node), params: f32 dict."""
    N, d_in = x.shape
    prep, (Di, Dh, Do, d_out) = prepare_params(params, compute_dtype)

    tm = _choose_tm(N, tm_max)
    n_pad = _round_up(N, tm)

    # Fused pad + cast of x (single XLA op). Padded rows carry mask=0 and are
    # sliced off (or must be ignored downstream if return_padded=True).
    x_p = jnp.zeros((n_pad, Di), compute_dtype).at[:N, :].set(x.astype(compute_dtype))
    m_p = jnp.zeros((n_pad, 1), jnp.float32).at[:N, :].set(mask_hidden)

    weight_order = ("W1cat", "b1cat", "rb1x2", "rW2", "rb2x2",
                    "pW1", "pb1", "W2cat", "pb2", "qb2")
    weight_args = [prep[k] for k in weight_order]

    def row_spec(shape):
        return pl.BlockSpec(shape, lambda i: (i, 0))

    def const_spec(arr):
        # Constant block index -> weights stay resident across the row grid.
        # TODO(synk): pipeline_mode=pl.Buffered(1) here once Dh is large enough
        # for the default double-buffering of weights to matter for VMEM.
        return pl.BlockSpec(arr.shape, lambda i: (0, 0))

    kernel = functools.partial(_invariant_layer_kernel, d_hidden_pad=Dh)

    cbytes = jnp.dtype(compute_dtype).itemsize
    obytes = jnp.dtype(out_dtype).itemsize
    w_bytes = sum(int(w.size) * jnp.dtype(w.dtype).itemsize for w in weight_args)
    flops = 2 * N * (Di * 2 * Dh + Dh * Di + Di * Dh + 2 * Dh * Do)
    bytes_accessed = n_pad * (Di * cbytes + 4 + Do * obytes) + w_bytes

    # Explicit scoped-VMEM budget: double-buffered row tiles + weights with
    # margin, floored at 32 MiB (so v5e's 16 MiB default never shrinks the
    # tile) and capped at v7x's 64 MiB physical VMEM.
    io_step = tm * (Di * cbytes + 4 + Do * obytes)
    vmem_limit = int(min(max(4 * io_step + 3 * w_bytes, 32 << 20), 64 << 20))

    out = pl.pallas_call(
        kernel,
        out_shape=jax.ShapeDtypeStruct((n_pad, Do), out_dtype),
        grid_spec=pltpu.PrefetchScalarGridSpec(
            num_scalar_prefetch=0,
            grid=(n_pad // tm,),
            in_specs=[row_spec((tm, Di)), row_spec((tm, 1))]
                     + [const_spec(w) for w in weight_args],
            out_specs=row_spec((tm, Do)),
        ),
        compiler_params=pltpu.CompilerParams(
            dimension_semantics=("parallel",),     # shards rows over v7x's 2 TCs
            vmem_limit_bytes=vmem_limit,
        ),
        cost_estimate=pl.CostEstimate(
            flops=int(flops), transcendentals=0,
            bytes_accessed=int(bytes_accessed)),
    )(x_p, m_p, *weight_args)

    if return_padded:
        # NOTE: rows >= N hold phi_in(0) values (not zeros); lanes >= d_out are 0.
        return out
    return out[:N, :d_out]


# ---------------------------------------------------------------------------
# Deterministic parameter init (shapes implied by __init__)
# ---------------------------------------------------------------------------
def init_params(key, d_in, d_hidden, d_out):
    ks = jax.random.split(key, 12)

    def lin(kw, kb, fan_in, fan_out):
        bound = 1.0 / jnp.sqrt(fan_in)
        W = jax.random.uniform(kw, (fan_in, fan_out), jnp.float32, -bound, bound)
        b = jax.random.uniform(kb, (1, fan_out), jnp.float32, -bound, bound)
        return W, b

    rW1, rb1 = lin(ks[0], ks[1], d_in, d_hidden)
    rW2, rb2 = lin(ks[2], ks[3], d_hidden, d_in)
    pW1, pb1 = lin(ks[4], ks[5], d_in, d_hidden)
    pW2, pb2 = lin(ks[6], ks[7], d_hidden, d_out)
    qW1, qb1 = lin(ks[8], ks[9], d_in, d_hidden)
    qW2, qb2 = lin(ks[10], ks[11], d_hidden, d_out)
    return dict(rW1=rW1, rb1=rb1, rW2=rW2, rb2=rb2,
                pW1=pW1, pb1=pb1, pW2=pW2, pb2=pb2,
                qW1=qW1, qb1=qb1, qW2=qW2, qb2=qb2)


# ---------------------------------------------------------------------------
# Pure-JAX reference (mirrors the PyTorch forward, original un-fused algebra)
# ---------------------------------------------------------------------------
def reference_forward(x, mask_hidden, p, compute_dtype=jnp.float32):
    c = compute_dtype

    def mm(a, w):
        return jnp.dot(a.astype(c), w.astype(c), preferred_element_type=jnp.float32)

    def mlp2(v, W1, b1, W2, b2):
        return mm(jnp.maximum(mm(v, W1) + b1, 0.0), W2) + b2

    r = mlp2(x, p["rW1"], p["rb1"], p["rW2"], p["rb2"]) \
        + mlp2(-x, p["rW1"], p["rb1"], p["rW2"], p["rb2"])
    x_canon = mlp2(r, p["pW1"], p["pb1"], p["pW2"], p["pb2"])
    x_io = mlp2(x, p["qW1"], p["qb1"], p["qW2"], p["qb2"])
    return mask_hidden * x_canon + (1.0 - mask_hidden) * x_io


# TODO(synk): sym='scale' (x / ||x||), sign_symmetrization=False (|x|),
# extra_features concat and num_mlps==3 branches not wired in this synthetic
# config; they reuse the identical row-gridded MLP+mask kernel structure.

if __name__ == "__main__":
    key = jax.random.PRNGKey(0)

    def run_case(N, d_in, d_hidden, d_out, case_key):
        k_x, k_m, k_p = jax.random.split(case_key, 3)
        x = jax.random.normal(k_x, (N, d_in), jnp.float32)
        mask_hidden = (jax.random.uniform(k_m, (N, 1)) > 0.5).astype(jnp.float32)
        params = init_params(k_p, d_in, d_hidden, d_out)

        # f32 matmul path (exact algebra rewrite; tight tolerance vs reference).
        fwd_f32 = jax.jit(functools.partial(invariant_layer_forward,
                                            compute_dtype=jnp.float32))
        out_f32 = jax.block_until_ready(fwd_f32(x, mask_hidden, params))
        ref_f32 = reference_forward(x, mask_hidden, params)
        assert out_f32.shape == (N, d_out)
        assert jnp.allclose(out_f32, ref_f32, atol=1e-4, rtol=1e-4), "f32 mismatch"

        # Default path: bf16 matmul operands (f32 accumulate / elementwise).
        fwd_bf16 = jax.jit(invariant_layer_forward)
        out_bf16 = jax.block_until_ready(fwd_bf16(x, mask_hidden, params))
        ref_bf16 = reference_forward(x, mask_hidden, params,
                                     compute_dtype=jnp.bfloat16)
        assert out_bf16.shape == (N, d_out)
        assert jnp.allclose(out_bf16, ref_bf16, atol=5e-2, rtol=5e-2), "bf16 mismatch"

    # Small demo shapes (single grid step) + a multi-step grid with non-128 dims.
    run_case(8, 32, 32, 32, jax.random.fold_in(key, 0))
    run_case(300, 32, 64, 48, jax.random.fold_in(key, 1))
    print("KERNEL_OK")
</pallas_src>

<mosaic_0001>
module attributes {stable_mosaic.version = 11 : i64} {
  func.func @_invariant_layer_kernel(%arg0: i32, %arg1: memref<16x32xf32, #tpu.memory_space<vmem>>, %arg2: memref<16x1xf32, #tpu.memory_space<vmem>>, %arg3: memref<32x256xf32, #tpu.memory_space<vmem>>, %arg4: memref<1x256xf32, #tpu.memory_space<vmem>>, %arg5: memref<1x128xf32, #tpu.memory_space<vmem>>, %arg6: memref<128x32xf32, #tpu.memory_space<vmem>>, %arg7: memref<1x32xf32, #tpu.memory_space<vmem>>, %arg8: memref<32x128xf32, #tpu.memory_space<vmem>>, %arg9: memref<1x128xf32, #tpu.memory_space<vmem>>, %arg10: memref<256x128xf32, #tpu.memory_space<vmem>>, %arg11: memref<1x128xf32, #tpu.memory_space<vmem>>, %arg12: memref<1x128xf32, #tpu.memory_space<vmem>>, %arg13: memref<16x128xf32, #tpu.memory_space<vmem>>) attributes {dimension_semantics = [#tpu.dimension_semantics<parallel>], iteration_bounds = array<i64: 1>, scalar_prefetch = 0 : i64, scratch_operands = 0 : i64, tpu.core_type = #tpu.core_type<tc>, window_params = [{transform_indices = @transform_0, window_bounds = array<i64: 16, 32>}, {transform_indices = @transform_1, window_bounds = array<i64: 16, 1>}, {pipeline_mode = #tpu.pipeline_mode<synchronous>, transform_indices = @transform_2, window_bounds = array<i64: 32, 256>}, {pipeline_mode = #tpu.pipeline_mode<synchronous>, transform_indices = @transform_3, window_bounds = array<i64: 1, 256>}, {pipeline_mode = #tpu.pipeline_mode<synchronous>, transform_indices = @transform_4, window_bounds = array<i64: 1, 128>}, {pipeline_mode = #tpu.pipeline_mode<synchronous>, transform_indices = @transform_5, window_bounds = array<i64: 128, 32>}, {pipeline_mode = #tpu.pipeline_mode<synchronous>, transform_indices = @transform_6, window_bounds = array<i64: 1, 32>}, {pipeline_mode = #tpu.pipeline_mode<synchronous>, transform_indices = @transform_7, window_bounds = array<i64: 32, 128>}, {pipeline_mode = #tpu.pipeline_mode<synchronous>, transform_indices = @transform_8, window_bounds = array<i64: 1, 128>}, {pipeline_mode = #tpu.pipeline_mode<synchronous>, transform_indices = @transform_9, window_bounds = array<i64: 256, 128>}, {pipeline_mode = #tpu.pipeline_mode<synchronous>, transform_indices = @transform_10, window_bounds = array<i64: 1, 128>}, {pipeline_mode = #tpu.pipeline_mode<synchronous>, transform_indices = @transform_11, window_bounds = array<i64: 1, 128>}, {transform_indices = @transform_12, window_bounds = array<i64: 16, 128>}]} {
    %c0 = arith.constant 0 : index
    %c0_0 = arith.constant 0 : index
    %0 = vector.load %arg1[%c0, %c0_0] : memref<16x32xf32, #tpu.memory_space<vmem>>, vector<16x32xf32>
    %c0_1 = arith.constant 0 : index
    %c0_2 = arith.constant 0 : index
    %1 = vector.load %arg3[%c0_1, %c0_2] : memref<32x256xf32, #tpu.memory_space<vmem>>, vector<32x256xf32>
    %cst = arith.constant dense<0.000000e+00> : vector<16x256xf32>
    %2 = tpu.matmul %0, %1, %cst {dimension_numbers = #tpu.dot_dimension_numbers<[1], [0], [0], [1], [0, 0, 1, 1], [], []>} : vector<16x32xf32>, vector<32x256xf32>, vector<16x256xf32> -> vector<16x256xf32>
    %c0_3 = arith.constant 0 : index
    %c0_4 = arith.constant 0 : index
    %3 = vector.load %arg4[%c0_3, %c0_4] : memref<1x256xf32, #tpu.memory_space<vmem>>, vector<1x256xf32>
    %4 = vector.broadcast %3 : vector<1x256xf32> to vector<16x256xf32>
    %5 = arith.addf %2, %4 : vector<16x256xf32>
    %6 = vector.extract_strided_slice %5 {offsets = [0, 0], sizes = [16, 128], strides = [1, 1]} : vector<16x256xf32> to vector<16x128xf32>
    %7 = vector.extract_strided_slice %5 {offsets = [0, 128], sizes = [16, 128], strides = [1, 1]} : vector<16x256xf32> to vector<16x128xf32>
    %cst_5 = arith.constant 0.000000e+00 : f32
    %8 = vector.broadcast %cst_5 : f32 to vector<16x128xf32>
    %9 = arith.maximumf %6, %8 : vector<16x128xf32>
    %c0_6 = arith.constant 0 : index
    %c0_7 = arith.constant 0 : index
    %10 = vector.load %arg5[%c0_6, %c0_7] : memref<1x128xf32, #tpu.memory_space<vmem>>, vector<1x128xf32>
    %11 = vector.broadcast %10 : vector<1x128xf32> to vector<16x128xf32>
    %12 = arith.subf %11, %6 : vector<16x128xf32>
    %cst_8 = arith.constant 0.000000e+00 : f32
    %13 = vector.broadcast %cst_8 : f32 to vector<16x128xf32>
    %14 = arith.maximumf %12, %13 : vector<16x128xf32>
    %15 = arith.addf %9, %14 : vector<16x128xf32>
    %c0_9 = arith.constant 0 : index
    %c0_10 = arith.constant 0 : index
    %16 = vector.load %arg6[%c0_9, %c0_10] : memref<128x32xf32, #tpu.memory_space<vmem>>, vector<128x32xf32>
    %cst_11 = arith.constant dense<0.000000e+00> : vector<16x32xf32>
    %17 = tpu.matmul %15, %16, %cst_11 {dimension_numbers = #tpu.dot_dimension_numbers<[1], [0], [0], [1], [0, 0, 1, 1], [], []>} : vector<16x128xf32>, vector<128x32xf32>, vector<16x32xf32> -> vector<16x32xf32>
    %c0_12 = arith.constant 0 : index
    %c0_13 = arith.constant 0 : index
    %18 = vector.load %arg7[%c0_12, %c0_13] : memref<1x32xf32, #tpu.memory_space<vmem>>, vector<1x32xf32>
    %19 = vector.broadcast %18 : vector<1x32xf32> to vector<16x32xf32>
    %20 = arith.addf %17, %19 : vector<16x32xf32>
    %c0_14 = arith.constant 0 : index
    %c0_15 = arith.constant 0 : index
    %21 = vector.load %arg8[%c0_14, %c0_15] : memref<32x128xf32, #tpu.memory_space<vmem>>, vector<32x128xf32>
    %cst_16 = arith.constant dense<0.000000e+00> : vector<16x128xf32>
    %22 = tpu.matmul %20, %21, %cst_16 {dimension_numbers = #tpu.dot_dimension_numbers<[1], [0], [0], [1], [0, 0, 1, 1], [], []>} : vector<16x32xf32>, vector<32x128xf32>, vector<16x128xf32> -> vector<16x128xf32>
    %c0_17 = arith.constant 0 : index
    %c0_18 = arith.constant 0 : index
    %23 = vector.load %arg9[%c0_17, %c0_18] : memref<1x128xf32, #tpu.memory_space<vmem>>, vector<1x128xf32>
    %24 = vector.broadcast %23 : vector<1x128xf32> to vector<16x128xf32>
    %25 = arith.addf %22, %24 : vector<16x128xf32>
    %cst_19 = arith.constant 0.000000e+00 : f32
    %26 = vector.broadcast %cst_19 : f32 to vector<16x128xf32>
    %27 = arith.maximumf %25, %26 : vector<16x128xf32>
    %cst_20 = arith.constant 0.000000e+00 : f32
    %28 = vector.broadcast %cst_20 : f32 to vector<16x128xf32>
    %29 = arith.maximumf %7, %28 : vector<16x128xf32>
    %c0_21 = arith.constant 0 : index
    %c0_22 = arith.constant 0 : index
    %30 = vector.load %arg2[%c0_21, %c0_22] : memref<16x1xf32, #tpu.memory_space<vmem>>, vector<16x1xf32>
    %cst_23 = arith.constant 1.000000e+00 : f32
    %31 = vector.broadcast %cst_23 : f32 to vector<16x1xf32>
    %32 = arith.subf %31, %30 : vector<16x1xf32>
    %33 = vector.broadcast %30 : vector<16x1xf32> to vector<16x128xf32>
    %34 = arith.mulf %33, %27 : vector<16x128xf32>
    %35 = vector.broadcast %32 : vector<16x1xf32> to vector<16x128xf32>
    %36 = arith.mulf %35, %29 : vector<16x128xf32>
    %37 = tpu.concatenate %34, %36 in 1 : vector<16x128xf32>, vector<16x128xf32> -> vector<16x256xf32>
    %c0_24 = arith.constant 0 : index
    %c0_25 = arith.constant 0 : index
    %38 = vector.load %arg12[%c0_24, %c0_25] : memref<1x128xf32, #tpu.memory_space<vmem>>, vector<1x128xf32>
    %c0_26 = arith.constant 0 : index
    %c0_27 = arith.constant 0 : index
    %39 = vector.load %arg11[%c0_26, %c0_27] : memref<1x128xf32, #tpu.memory_space<vmem>>, vector<1x128xf32>
    %c0_28 = arith.constant 0 : index
    %c0_29 = arith.constant 0 : index
    %40 = vector.load %arg12[%c0_28, %c0_29] : memref<1x128xf32, #tpu.memory_space<vmem>>, vector<1x128xf32>
    %41 = arith.subf %39, %40 : vector<1x128xf32>
    %42 = vector.broadcast %30 : vector<16x1xf32> to vector<16x128xf32>
    %43 = vector.broadcast %41 : vector<1x128xf32> to vector<16x128xf32>
    %44 = arith.mulf %42, %43 : vector<16x128xf32>
    %45 = vector.broadcast %38 : vector<1x128xf32> to vector<16x128xf32>
    %46 = arith.addf %45, %44 : vector<16x128xf32>
    %c0_30 = arith.constant 0 : index
    %c0_31 = arith.constant 0 : index
    %47 = vector.load %arg10[%c0_30, %c0_31] : memref<256x128xf32, #tpu.memory_space<vmem>>, vector<256x128xf32>
    %cst_32 = arith.constant dense<0.000000e+00> : vector<16x128xf32>
    %48 = tpu.matmul %37, %47, %cst_32 {dimension_numbers = #tpu.dot_dimension_numbers<[1], [0], [0], [1], [0, 0, 1, 1], [], []>} : vector<16x256xf32>, vector<256x128xf32>, vector<16x128xf32> -> vector<16x128xf32>
    %49 = arith.addf %48, %46 : vector<16x128xf32>
    %c0_33 = arith.constant 0 : index
    %c0_34 = arith.constant 0 : index
    %50 = vector.load %arg13[%c0_33, %c0_34] : memref<16x128xf32, #tpu.memory_space<vmem>>, vector<16x128xf32>
    tpu.vector_store %arg13[%c0_33, %c0_34], %49 {strides = array<i32>} : memref<16x128xf32, #tpu.memory_space<vmem>>, vector<16x128xf32>,
    return
  }
  func.func @transform_0(%arg0: i32) -> (i32, i32) {
    %c0_i32 = arith.constant 0 : i32
    %c0_i32_0 = arith.constant 0 : i32
    return %arg0, %c0_i32 : i32, i32
  }
  func.func @transform_1(%arg0: i32) -> (i32, i32) {
    %c0_i32 = arith.constant 0 : i32
    %c0_i32_0 = arith.constant 0 : i32
    return %arg0, %c0_i32 : i32, i32
  }
  func.func @transform_2(%arg0: i32) -> (i32, i32) {
    %c0_i32 = arith.constant 0 : i32
    %c0_i32_0 = arith.constant 0 : i32
    %c0_i32_1 = arith.constant 0 : i32
    return %c0_i32, %c0_i32_0 : i32, i32
  }
  func.func @transform_3(%arg0: i32) -> (i32, i32) {
    %c0_i32 = arith.constant 0 : i32
    %c0_i32_0 = arith.constant 0 : i32
    %c0_i32_1 = arith.constant 0 : i32
    return %c0_i32, %c0_i32_0 : i32, i32
  }
  func.func @transform_4(%arg0: i32) -> (i32, i32) {
    %c0_i32 = arith.constant 0 : i32
    %c0_i32_0 = arith.constant 0 : i32
    %c0_i32_1 = arith.constant 0 : i32
    return %c0_i32, %c0_i32_0 : i32, i32
  }
  func.func @transform_5(%arg0: i32) -> (i32, i32) {
    %c0_i32 = arith.constant 0 : i32
    %c0_i32_0 = arith.constant 0 : i32
    %c0_i32_1 = arith.constant 0 : i32
    return %c0_i32, %c0_i32_0 : i32, i32
  }
  func.func @transform_6(%arg0: i32) -> (i32, i32) {
    %c0_i32 = arith.constant 0 : i32
    %c0_i32_0 = arith.constant 0 : i32
    %c0_i32_1 = arith.constant 0 : i32
    return %c0_i32, %c0_i32_0 : i32, i32
  }
  func.func @transform_7(%arg0: i32) -> (i32, i32) {
    %c0_i32 = arith.constant 0 : i32
    %c0_i32_0 = arith.constant 0 : i32
    %c0_i32_1 = arith.constant 0 : i32
    return %c0_i32, %c0_i32_0 : i32, i32
  }
  func.func @transform_8(%arg0: i32) -> (i32, i32) {
    %c0_i32 = arith.constant 0 : i32
    %c0_i32_0 = arith.constant 0 : i32
    %c0_i32_1 = arith.constant 0 : i32
    return %c0_i32, %c0_i32_0 : i32, i32
  }
  func.func @transform_9(%arg0: i32) -> (i32, i32) {
    %c0_i32 = arith.constant 0 : i32
    %c0_i32_0 = arith.constant 0 : i32
    %c0_i32_1 = arith.constant 0 : i32
    return %c0_i32, %c0_i32_0 : i32, i32
  }
  func.func @transform_10(%arg0: i32) -> (i32, i32) {
    %c0_i32 = arith.constant 0 : i32
    %c0_i32_0 = arith.constant 0 : i32
    %c0_i32_1 = arith.constant 0 : i32
    return %c0_i32, %c0_i32_0 : i32, i32
  }
  func.func @transform_11(%arg0: i32) -> (i32, i32) {
    %c0_i32 = arith.constant 0 : i32
    %c0_i32_0 = arith.constant 0 : i32
    %c0_i32_1 = arith.constant 0 : i32
    return %c0_i32, %c0_i32_0 : i32, i32
  }
  func.func @transform_12(%arg0: i32) -> (i32, i32) {
    %c0_i32 = arith.constant 0 : i32
    %c0_i32_0 = arith.constant 0 : i32
    return %arg0, %c0_i32 : i32, i32
  }
}

</mosaic_0001>

<bundles_post_ra>
// kernel: invariant_layer_forward.1
= control target key start
LH: loop header
LB: loop body
LE: loop exit
PB: predicated region body
PF: predicated region fallthrough
CT: control target
= control target key end

     0   :  { %v715_v3 = vmov 0.0   ;;  %v716_v4 = vmov 0   ;;  %vm63_vm0 = vcmask 261120   ;;  %v53_v47 = vlaneseq  ;;  %s1010_s2 = inlined_call_operand.vmem [shape: f32[32,256], index: 2, kind: input, shape index: {}]   ;;  %s1011_s1 = inlined_call_operand.vmem [shape: f32[16,1], index: 1, kind: input, shape index: {}]   ;;  %s1012_s5 = inlined_call_operand.vmem [shape: f32[128,32], index: 5, kind: input, shape index: {}]   ;;  %s1013_s0 = inlined_call_operand.vmem [shape: f32[16,32], index: 0, kind: input, shape index: {}]   ;;  %s1014_s7 = inlined_call_operand.vmem [shape: f32[32,128], index: 7, kind: input, shape index: {}]   ;;  %s1015_s3 = inlined_call_operand.vmem [shape: f32[1,256], index: 3, kind: input, shape index: {}]   ;;  %s1016_s4 = inlined_call_operand.vmem [shape: f32[1,128], index: 4, kind: input, shape index: {}]   ;;  %s1017_s9 = inlined_call_operand.vmem [shape: f32[256,128], index: 9, kind: input, shape index: {}]   ;;  %s1018_s6 = inlined_call_operand.vmem [shape: f32[1,32], index: 6, kind: input, shape index: {}]   ;;  %s1019_s8 = inlined_call_operand.vmem [shape: f32[1,128], index: 8, kind: input, shape index: {}]   ;;  %s1020_s10 = inlined_call_operand.vmem [shape: f32[1,128], index: 10, kind: input, shape index: {}]   ;;  %s1021_s11 = inlined_call_operand.vmem [shape: f32[1,128], index: 11, kind: input, shape index: {}]   ;;  %s1022_s12 = inlined_call_operand.vmem [shape: f32[16,128], index: 12, kind: output, shape index: {}]  }
   0x1   :  { %v44_v0 = vld [vmem:[%s1010_s2 + $0x8] sm:$0xff]  ;;  %v46_v1 = vld [vmem:[%s1010_s2 + $0x18] sm:$0xff]  ;;  %v43_v2 = vld [vmem:[%s1010_s2] sm:$0xff]  ;;  %134 = vmatprep.mubr.f32.mxu1 %v715_v3  ;;  %713 = vset.pattern.permute.xlu0 %v716_v4 }
   0x2   :  { %v631_v5 = vpack.c.bf16 %v46_v1, %v44_v0  ;;  %v45_v6 = vld [vmem:[%s1010_s2 + $0x10] sm:$0xff]  ;;  %v48_v7 = vld [vmem:[%s1010_s2 + $0x28] sm:$0xff]  ;;  %v50_v8 = vld [vmem:[%s1010_s2 + $0x38] sm:$0xff]  ;;  %714 = vset.pattern.permute.xlu1 %v716_v4  ;;  %v54_v48 = vshrl.u32 %v53_v47, 7 }
   0x3   :  { %v633_v9 = vpack.c.bf16 %v45_v6, %v43_v2  ;;  %v635_v10 = vpack.c.bf16 %v50_v8, %v48_v7  ;;  %v47_v11 = vld [vmem:[%s1010_s2 + $0x20] sm:$0xff]  ;;  %v49_v12 = vld [vmem:[%s1010_s2 + $0x30] sm:$0xff]  ;;  %v357_v14 = vld [vmem:[%s1011_s1 + $0x8] sm:$0xff] }
   0x4   :  { %632 = vmatprep.subr.bf16.mxu1 %v631_v5  ;;  %v356_v13 = vld [vmem:[%s1011_s1] sm:$0xff]  ;;  %v637_v15 = vpack.c.bf16 %v49_v12, %v47_v11  ;;  %v359_v17 = vsub.f32 1.0, %v357_v14  ;;  %v163_v19 = vld [vmem:[%s1012_s5 + $0x8] sm:$0xff]  ;;  %v164_v21 = vld [vmem:[%s1012_s5 + $0x10] sm:$0xff]  ;;  %v874_v49 = vsub.s32 0, %v54_v48  ;;  %v59_v54 = vsub.s32 1, %v54_v48 }
   0x5   :  { %634 = vmatpush1.bf16.msra.mxu1 %v633_v9  ;;  %v358_v16 = vsub.f32 1.0, %v356_v13  ;;  %v162_v18 = vld [vmem:[%s1012_s5] sm:$0xff]  ;;  %v165_v22 = vld [vmem:[%s1012_s5 + $0x18] sm:$0xff]  ;;  %v167_v26 = vld [vmem:[%s1012_s5 + $0x28] sm:$0xff] }
   0x6   :  { %636 = vmatprep.subr.bf16.mxu1 %v635_v10  ;;  %v639_v20 = vpack.c.bf16 %v163_v19, %v162_v18  ;;  %379 = vperm.xlu1 %714, %v359_v17   ;;  %v41_v23 = vld [vmem:[%s1013_s0] sm:$0xff]  ;;  %v643_v24 = vpack.c.bf16 %v165_v22, %v164_v21  ;;  %v42_v27 = vld [vmem:[%s1013_s0 + $0x8] sm:$0xff]  ;;  %v168_v29 = vld [vmem:[%s1012_s5 + $0x30] sm:$0xff] }
   0x7   :  { %374 = vperm.xlu0 %713, %v358_v16   ;;  %v166_v25 = vld [vmem:[%s1012_s5 + $0x20] sm:$0xff]  ;;  %v169_v30 = vld [vmem:[%s1012_s5 + $0x38] sm:$0xff]  ;;  %v171_v33 = vld [vmem:[%s1012_s5 + $0x48] sm:$0xff] }
   0x8   :  { %v647_v28 = vpack.c.bf16 %v167_v26, %v166_v25  ;;  %v651_v31 = vpack.c.bf16 %v169_v30, %v168_v29  ;;  %v170_v32 = vld [vmem:[%s1012_s5 + $0x40] sm:$0xff]  ;;  %v172_v35 = vld [vmem:[%s1012_s5 + $0x50] sm:$0xff]  ;;  %v173_v36 = vld [vmem:[%s1012_s5 + $0x58] sm:$0xff] }
   0x9   :  { %638 = vmatpush1.bf16.msra.mxu1 %v637_v15  ;;  %v655_v34 = vpack.c.bf16 %v171_v33, %v170_v32  ;;  %v659_v37 = vpack.c.bf16 %v173_v36, %v172_v35  ;;  %v174_v38 = vld [vmem:[%s1012_s5 + $0x60] sm:$0xff]  ;;  %v175_v39 = vld [vmem:[%s1012_s5 + $0x68] sm:$0xff]  ;;  %v176_v41 = vld [vmem:[%s1012_s5 + $0x70] sm:$0xff] }
   0xa   :  { %640 = vmatprep.subr.bf16.mxu1 %v639_v20  ;;  %367 = vperm.xlu1 %714, %v357_v14   ;;  %v663_v40 = vpack.c.bf16 %v175_v39, %v174_v38  ;;  %v177_v42 = vld [vmem:[%s1012_s5 + $0x78] sm:$0xff]  ;;  %v260_v44 = vld [vmem:[%s1014_s7] sm:$0xff]  ;;  %v261_v45 = vld [vmem:[%s1014_s7 + $0x8] sm:$0xff] }
   0xb   :  { %362 = vperm.xlu0 %713, %v356_v13   ;;  %v667_v43 = vpack.c.bf16 %v177_v42, %v176_v41  ;;  %v671_v46 = vpack.c.bf16 %v261_v45, %v260_v44  ;;  %v51_v50 = vld [vmem:[%s1015_s3] sm:$0x3]  ;;  %v262_v6 = vld [vmem:[%s1014_s7 + $0x10] sm:$0xff]  ;;  %v263_v7 = vld [vmem:[%s1014_s7 + $0x18] sm:$0xff] }
   0xc   :  { %516 = vmatmul.mubr.msk.f32.vlgmr.msra.gmra.mrb[0].mxu1 %vm63_vm0, %v41_v23  ;;  %v56_v51 = vrot.slane %v51_v50, %v874_v49  ;;  %v518_v53 = vld [vmem:[%s1016_s4] ss:$0 sm:$0xff]  ;;  %v60_v58 = vrot.slane %v51_v50, %v59_v54  ;;  %v675_v8 = vpack.c.bf16 %v263_v7, %v262_v6  ;;  %v420_v10 = vld [vmem:[%s1017_s9 + $0x88] sm:$0xff]  ;;  %v421_v18 = vld [vmem:[%s1017_s9 + $0x90] sm:$0xff] }
   0xd   :  { %140 = vmatprep.mubr.f32.mxu1 %v715_v3  ;;  %642 = vmatpush3.bf16.msra.mxu1 %v639_v20  ;;  %v419_v9 = vld [vmem:[%s1017_s9 + $0x80] sm:$0xff]  ;;  %v404_v15 = vld [vmem:[%s1017_s9 + $0x8] sm:$0xff]  ;;  %v422_v19 = vld [vmem:[%s1017_s9 + $0x98] sm:$0xff] }
   0xe   :  { %644 = vmatprep.subr.bf16.mxu1 %v643_v24  ;;  %672 = vmatprep.subr.bf16.mxu0 %v671_v46  ;;  %v679_v11 = vpack.c.bf16 %v420_v10, %v419_v9  ;;  %v519_v13 = vld [vmem:[%s1018_s6] ss:$0 sm:$0xff]  ;;  %v683_v25 = vpack.c.bf16 %v422_v19, %v421_v18  ;;  %v405_v26 = vld [vmem:[%s1017_s9 + $0x10] sm:$0xff]  ;;  %v424_v30 = vld [vmem:[%s1017_s9 + $0xa8] sm:$0xff] }
   0xf   :  { %674 = vmatpush3.bf16.msra.mxu0 %v671_v46  ;;  %v403_v14 = vld [vmem:[%s1017_s9] sm:$0xff]  ;;  %v425_v35 = vld [vmem:[%s1017_s9 + $0xb0] sm:$0xff]  ;;  %v426_v36 = vld [vmem:[%s1017_s9 + $0xb8] sm:$0xff] }
  0x10   :  { %517 = vmatmul.mubr.msk.f32.gmra.mrb[2].mxu1 %vm63_vm0, %v42_v27  ;;  %676 = vmatprep.subr.bf16.mxu0 %v675_v8  ;;  %v681_v23 = vpack.c.bf16 %v404_v15, %v403_v14  ;;  %v406_v27 = vld [vmem:[%s1017_s9 + $0x18] sm:$0xff]  ;;  %v423_v29 = vld [vmem:[%s1017_s9 + $0xa0] sm:$0xff]  ;;  %v691_v38 = vpack.c.bf16 %v426_v36, %v425_v35  ;;  %v409_v39 = vld [vmem:[%s1017_s9 + $0x30] sm:$0xff] }
  0x11   :  { %646 = vmatpush3.bf16.msra.mxu1 %v643_v24  ;;  %v687_v32 = vpack.c.bf16 %v424_v30, %v423_v29  ;;  %v407_v33 = vld [vmem:[%s1017_s9 + $0x20] sm:$0xff]  ;;  %v428_v42 = vld [vmem:[%s1017_s9 + $0xc8] sm:$0xff]  ;;  %v429_v47 = vld [vmem:[%s1017_s9 + $0xd0] sm:$0xff] }
  0x12   :  { %648 = vmatprep.subr.bf16.mxu1 %v647_v28  ;;  %v427_v41 = vld [vmem:[%s1017_s9 + $0xc0] sm:$0xff]  ;;  %v412_v46 = vld [vmem:[%s1017_s9 + $0x48] sm:$0xff]  ;;  %v430_v48 = vld [vmem:[%s1017_s9 + $0xd8] sm:$0xff] }
  0x13   :  { %678 = vmatpush3.bf16.msra.mxu0 %v675_v8  ;;  %v695_v44 = vpack.c.bf16 %v428_v42, %v427_v41  ;;  %v411_v45 = vld [vmem:[%s1017_s9 + $0x40] sm:$0xff] }
  0x14   :  { %680 = vmatprep.subr.bf16.mxu0 %v679_v11  ;;  %v697_v50 = vpack.c.bf16 %v412_v46, %v411_v45  ;;  %v384_v18 = vld [vmem:[%s1021_s11] sm:$0x1] }
  0x15   :  { %650 = vmatpush3.bf16.msra.mxu1 %v647_v28  ;;  %v385_v19 = vld [vmem:[%s1020_s10] sm:$0x1] }
  0x16   :  { %652 = vmatprep.subr.bf16.mxu1 %v651_v31 }
  0x19   :  { %654 = vmatpush3.bf16.msra.mxu1 %v651_v31  ;;  %v685_v31 = vpack.c.bf16 %v406_v27, %v405_v26 }
  0x1a   :  { %656 = vmatprep.subr.bf16.mxu1 %v655_v34 }
  0x1d   :  { %658 = vmatpush3.bf16.msra.mxu1 %v655_v34  ;;  %v408_v34 = vld [vmem:[%s1017_s9 + $0x28] sm:$0xff] }
  0x1e   :  { %660 = vmatprep.subr.bf16.mxu1 %v659_v37 }
  0x21   :  { %662 = vmatpush3.bf16.msra.mxu1 %v659_v37  ;;  %v689_v37 = vpack.c.bf16 %v408_v34, %v407_v33 }
  0x22   :  { %664 = vmatprep.subr.bf16.mxu1 %v663_v40 }
  0x25   :  { %666 = vmatpush3.bf16.msra.mxu1 %v663_v40  ;;  %v410_v40 = vld [vmem:[%s1017_s9 + $0x38] sm:$0xff] }
  0x26   :  { %668 = vmatprep.subr.bf16.mxu1 %v667_v43 }
  0x29   :  { %670 = vmatpush3.bf16.msra.mxu1 %v667_v43  ;;  %v693_v43 = vpack.c.bf16 %v410_v40, %v409_v39 }
  0x85   :  { %v380_v10 = vpop.permute.xlu1 %379 }
  0x86   :  { %v375_v20 = vpop.permute.xlu0 %374 }
  0xdf   :  { %v136_v52 = vpop.f32.mrb[0].mxu1 }
  0xe0   :  { %v137_v55 = vadd.f32 %v136_v52, %v56_v51  ;;  %v138_v56 = vpop.f32.mrb[1].mxu1  ;;  %v413_v52 = vld [vmem:[%s1017_s9 + $0x50] sm:$0xff] }
  0xe1   :  { %v139_v12 = vadd.f32 %v138_v56, %v60_v58  ;;  %v432_v56 = vld [vmem:[%s1017_s9 + $0xe8] sm:$0xff] }
  0xe2   :  { %v156_v57 = vsub.f32 %v518_v53, %v137_v55  ;;  %v147_v60 = vmax.f32 %v137_v55, 0.0  ;;  %v431_v55 = vld [vmem:[%s1017_s9 + $0xe0] sm:$0xff] }
  0xe3   :  { %v142_v59 = vpop.f32.mrb[2].mxu1  ;;  %v354_v16 = vmax.f32 %v139_v12, 0.0  ;;  %v363_v12 = vpop.permute.xlu0 %362 }
  0xe4   :  { %v158_v61 = vmax.f32 %v156_v57, 0.0  ;;  %v143_v62 = vadd.f32 %v142_v59, %v56_v51  ;;  %v144_v63 = vpop.f32.mrb[3].mxu1  ;;  %v699_v51 = vpack.c.bf16 %v430_v48, %v429_v47  ;;  %v703_v57 = vpack.c.bf16 %v432_v56, %v431_v55  ;;  %v416_v59 = vld [vmem:[%s1017_s9 + $0x68] sm:$0xff] }
  0xe5   :  { %v883_v0 = vadd.f32 %v144_v63, %v60_v58  ;;  %v382_v28 = vmul.f32 %v375_v20, %v354_v16  ;;  %v415_v58 = vld [vmem:[%s1017_s9 + $0x60] sm:$0xff]  ;;  %v368_v16 = vpop.permute.xlu1 %367 }
  0xe6   :  { %v157_v1 = vsub.f32 %v518_v53, %v143_v62  ;;  %v160_v2 = vadd.f32 %v158_v61, %v147_v60  ;;  %v148_v3 = vmax.f32 %v143_v62, 0.0  ;;  %v414_v53 = vld [vmem:[%s1017_s9 + $0x58] sm:$0xff]  ;;  %v705_v60 = vpack.c.bf16 %v416_v59, %v415_v58  ;;  %v433_v61 = vld [vmem:[%s1017_s9 + $0xf0] sm:$0xff] }
  0xe7   :  { %v701_v54 = vpack.c.bf16 %v414_v53, %v413_v52  ;;  %v434_v62 = vld [vmem:[%s1017_s9 + $0xf8] sm:$0xff]  ;;  %v355_v9 = vmax.f32 %v883_v0, 0.0  ;;  %v386_v0 = vsub.f32 %v385_v19, %v384_v18 }
  0xe8   :  { %v159_v4 = vmax.f32 %v157_v1, 0.0  ;;  %617 = vmatprep.mubr.f32.mxu1 %v160_v2  ;;  %v707_v63 = vpack.c.bf16 %v434_v62, %v433_v61  ;;  %v417_v1 = vld [vmem:[%s1017_s9 + $0x70] sm:$0xff]  ;;  %v418_v2 = vld [vmem:[%s1017_s9 + $0x78] sm:$0xff] }
  0xe9   :  { %v383_v15 = vmul.f32 %v380_v10, %v355_v9  ;;  %v391_v20 = vrot.slane %v386_v0, %v874_v49 }
  0xea   :  { %v161_v5 = vadd.f32 %v159_v4, %v148_v3  ;;  %v709_v3 = vpack.c.bf16 %v418_v2, %v417_v1  ;;  %v520_v4 = vld [vmem:[%s1019_s8] ss:$0 sm:$0xff] }
  0xeb   :  { %v394_v26 = vmul.f32 %v391_v20, %v368_v16 }
  0xec   :  { %618 = vmatmul.mubr.f32.vlgmr.msra.gmra.mrb[4].mxu1 %v161_v5 }
 0x1bf   :  { %v619_v17 = vpop.f32.mrb[4].mxu1 }
 0x1c0   :  { %v251_v21 = vpop.f32.mrb[5].mxu1  ;;  %v257_v24 = vadd.f32 %v619_v17, %v519_v13 }
 0x1c1   :  { %v252_v22 = vadd.f32 %v519_v13, %v251_v21  ;;  %v399_v21 = vrot.slane %v384_v18, %v874_v49 }
 0x1c3   :  { %628 = vmatprep.mubr.msk.f32.mxu0 %vm63_vm0, %v252_v22  ;;  %v393_v22 = vmul.f32 %v391_v20, %v363_v12 }
 0x1c4   :  { %629 = vmatmul.mubr.msk.f32.vlgmr.msra.gmra.mrb[0].mxu0 %vm63_vm0, %v257_v24 }
 0x1c5   :  { %499 = vmatprep.mubr.f32.mxu0 %v382_v28  ;;  %682 = vmatpush3.bf16.msra.mxu0 %v681_v23 }
 0x1c6   :  { %684 = vmatprep.subr.bf16.mxu0 %v683_v25  ;;  %v401_v25 = vadd.f32 %v399_v21, %v393_v22 }
 0x1c9   :  { %686 = vmatpush3.bf16.msra.mxu0 %v685_v31  ;;  %v402_v31 = vadd.f32 %v399_v21, %v394_v26 }
 0x1ca   :  { %688 = vmatprep.subr.bf16.mxu0 %v687_v32 }
 0x1cd   :  { %690 = vmatpush3.bf16.msra.mxu0 %v689_v37 }
 0x1ce   :  { %692 = vmatprep.subr.bf16.mxu0 %v691_v38 }
 0x1d1   :  { %694 = vmatpush3.bf16.msra.mxu0 %v693_v43 }
 0x1d2   :  { %696 = vmatprep.subr.bf16.mxu0 %v695_v44 }
 0x1d5   :  { %698 = vmatpush3.bf16.msra.mxu0 %v697_v50 }
 0x1d6   :  { %700 = vmatprep.subr.bf16.mxu0 %v699_v51 }
 0x1d9   :  { %702 = vmatpush3.bf16.msra.mxu0 %v701_v54 }
 0x1da   :  { %704 = vmatprep.subr.bf16.mxu0 %v703_v57 }
 0x1dd   :  { %706 = vmatpush3.bf16.msra.mxu0 %v705_v60 }
 0x1de   :  { %708 = vmatprep.subr.bf16.mxu0 %v707_v63 }
 0x1e1   :  { %710 = vmatpush3.bf16.msra.mxu0 %v709_v3 }
 0x297   :  { %v630_v5 = vpop.f32.mrb[0].mxu0 }
 0x298   :  { %v343_v6 = vpop.f32.mrb[1].mxu0  ;;  %v349_v7 = vadd.f32 %v630_v5, %v520_v4 }
 0x299   :  { %v344_v8 = vadd.f32 %v520_v4, %v343_v6 }
 0x29a   :  { %v353_v13 = vmax.f32 %v349_v7, 0.0 }
 0x29b   :  { %v352_v11 = vmax.f32 %v344_v8, 0.0 }
 0x29c   :  { %v371_v17 = vmul.f32 %v368_v16, %v353_v13 }
 0x29d   :  { %v370_v14 = vmul.f32 %v363_v12, %v352_v11 }
 0x29f   :  { %500 = vmatmul.mubr.f32.vlgmr.msra.gmra.mrb[2].mxu0 %v370_v14 }
 0x2a0   :  { %504 = vmatprep.mubr.f32.mxu0 %v383_v15 }
 0x2a3   :  { %505 = vmatmul.mubr.f32.gmra.mrb[4].mxu0 %v371_v17 }
 0x372   :  { %v579_v23 = vpop.f32.mrb[2].mxu0 }
 0x373   :  { %v580_v24 = vpop.f32.mrb[3].mxu0 }
 0x374   :  { %v581_v27 = vadd.f32 %v580_v24, %v579_v23 }
 0x376   :  { %v502_v28 = vadd.f32 %v581_v27, %v401_v25  ;;  %v582_v29 = vpop.f32.mrb[4].mxu0 }
 0x377   :  { %v583_v30 = vpop.f32.mrb[5].mxu0 }
 0x378   :  { %510 = vst [vmem:[%s1022_s12] sm:$0xff] %v502_v28  ;;  %v584_v32 = vadd.f32 %v583_v30, %v582_v29 }
 0x37a   :  { %v507_v33 = vadd.f32 %v584_v32, %v402_v31 }
 0x37c   :  { %511 = vst [vmem:[%s1022_s12 + $0x8] sm:$0xff] %v507_v33 }

</bundles_post_ra>
